<compile_context>
chip_gen: v6e
topology: v6e:2x2x1
jax: 0.10.0
libtpu: 0.0.40
codegen_flags: <defaults>
</compile_context>

<pallas_src>
import jax
import jax.numpy as jnp
from jax.experimental import pallas as pl
from jax.experimental.pallas import tpu as pltpu

D_IN = 1024
D_LAT = 128


def wmlatent_kernel(x_ref, w1_ref, b1_ref, w2_ref, b2_ref, out_ref, lat_ref):
    # x_ref:  (TILE_B, 1024)   w1_ref: (1024, 128)  b1_ref: (1, 128)
    # w2_ref: (128, 1024)      b2_ref: (1, 1024)
    x = x_ref[...]
    latent = jnp.dot(x, w1_ref[...], preferred_element_type=jnp.float32) + b1_ref[...]
    # TODO(synk): nan_canary() in the reference module is a debug-time NaN assertion;
    # there is no side-effecting equivalent inside a Pallas kernel (use
    # pl.debug_check under pl.enable_debug_checks() when testing).
    lat_ref[...] = latent.astype(lat_ref.dtype)
    out = jnp.dot(latent, w2_ref[...], preferred_element_type=jnp.float32) + b2_ref[...]
    out_ref[...] = out.astype(out_ref.dtype)


def wmlatent_forward(x_nchw, w1, b1, w2, b2, *, tile_b=512):
    """x_nchw: (B, C, H, W) with C*H*W == 1024. Returns (x_out_nchw, latent)."""
    B, C, H, W = x_nchw.shape
    D_in = C * H * W
    assert D_in == D_IN, "WMLatent expects flattened feature dim of 1024"

    x_flat = x_nchw.reshape(B, D_in)  # flatten()

    # Batch tile: if B is smaller than the requested tile, the block covers the
    # full batch dim (allowed even when not a multiple of 8). When actually
    # tiling, keep the tile a multiple of 8 sublanes.
    tb = min(tile_b, B)
    if tb < B and tb % 8 != 0:
        tb = 8 * pl.cdiv(tb, 8)
    grid = (pl.cdiv(B, tb),)

    # Advisory cost estimate: two (B,1024)x(1024<->128) matmuls; f32 traffic for
    # x in, x out, latent out, both weight matrices and both biases.
    flops = 4 * B * D_IN * D_LAT  # 2*M*N*K per matmul, two matmuls
    bytes_accessed = 4 * (B * D_IN * 2 + B * D_LAT + D_IN * D_LAT * 2 + D_IN + D_LAT)

    out_flat, latent = pl.pallas_call(
        wmlatent_kernel,
        grid=grid,
        in_specs=[
            pl.BlockSpec((tb, D_IN), lambda i: (i, 0)),       # x: streamed per tile
            pl.BlockSpec((D_IN, D_LAT), lambda i: (0, 0)),    # w1: VMEM-resident
            pl.BlockSpec((1, D_LAT), lambda i: (0, 0)),       # b1: VMEM-resident
            pl.BlockSpec((D_LAT, D_IN), lambda i: (0, 0)),    # w2: VMEM-resident
            pl.BlockSpec((1, D_IN), lambda i: (0, 0)),        # b2: VMEM-resident
        ],
        out_specs=[
            pl.BlockSpec((tb, D_IN), lambda i: (i, 0)),       # reconstructed x
            pl.BlockSpec((tb, D_LAT), lambda i: (i, 0)),      # latent
        ],
        out_shape=(
            jax.ShapeDtypeStruct((B, D_IN), jnp.float32),
            jax.ShapeDtypeStruct((B, D_LAT), jnp.float32),
        ),
        compiler_params=pltpu.CompilerParams(
            dimension_semantics=("parallel",),   # megacore sharding on v7x
            vmem_limit_bytes=64 << 20,
        ),
        cost_estimate=pl.CostEstimate(
            flops=flops, transcendentals=0, bytes_accessed=bytes_accessed
        ),
    )(x_flat, w1, b1, w2, b2)

    x_out = out_flat.reshape(B, C, H, W)  # unflatten()
    return x_out, latent


def _ref_forward(x_nchw, w1, b1, w2, b2):
    B, C, H, W = x_nchw.shape
    lat = x_nchw.reshape(B, C * H * W) @ w1 + b1
    out = (lat @ w2 + b2).reshape(B, C, H, W)
    return out, lat


if __name__ == "__main__":
    key = jax.random.PRNGKey(0)
    k_x, k_w1, k_b1, k_w2, k_b2, k_x2 = jax.random.split(key, 6)

    # Deterministic param init mimicking nn.Linear's U(-1/sqrt(fan_in), 1/sqrt(fan_in)).
    # Stored pre-transposed: (in_features, out_features).
    bound1 = 1.0 / jnp.sqrt(jnp.float32(D_IN))
    w1 = jax.random.uniform(k_w1, (D_IN, D_LAT), jnp.float32, -bound1, bound1)
    b1 = jax.random.uniform(k_b1, (1, D_LAT), jnp.float32, -bound1, bound1)

    bound2 = 1.0 / jnp.sqrt(jnp.float32(D_LAT))
    w2 = jax.random.uniform(k_w2, (D_LAT, D_IN), jnp.float32, -bound2, bound2)
    b2 = jax.random.uniform(k_b2, (1, D_IN), jnp.float32, -bound2, bound2)

    fwd = jax.jit(wmlatent_forward)

    # --- Case 1: module-sized small batch (B=2, C=4, H=16, W=16 -> 1024 features).
    B, C, H, W = 2, 4, 16, 16
    x = jax.random.normal(k_x, (B, C, H, W), dtype=jnp.float32)
    x_out, latent = fwd(x, w1, b1, w2, b2)
    jax.block_until_ready((x_out, latent))

    out_ref, lat_ref = _ref_forward(x, w1, b1, w2, b2)
    assert x_out.shape == (B, C, H, W) and latent.shape == (B, D_LAT)
    assert jnp.allclose(latent, lat_ref, atol=1e-4, rtol=1e-4)
    assert jnp.allclose(x_out, out_ref, atol=1e-4, rtol=1e-4)

    # --- Case 2: exercise the tiled / pipelined path incl. a partial last tile.
    B2 = 20
    x2 = jax.random.normal(k_x2, (B2, C, H, W), dtype=jnp.float32)
    fwd_tiled = jax.jit(lambda *a: wmlatent_forward(*a, tile_b=8))
    x_out2, latent2 = fwd_tiled(x2, w1, b1, w2, b2)
    jax.block_until_ready((x_out2, latent2))

    out_ref2, lat_ref2 = _ref_forward(x2, w1, b1, w2, b2)
    assert x_out2.shape == (B2, C, H, W) and latent2.shape == (B2, D_LAT)
    assert jnp.allclose(latent2, lat_ref2, atol=1e-4, rtol=1e-4)
    assert jnp.allclose(x_out2, out_ref2, atol=1e-4, rtol=1e-4)

    print("KERNEL_OK")
</pallas_src>

<mosaic_0001>
module attributes {stable_mosaic.version = 11 : i64} {
  func.func @wmlatent_kernel(%arg0: i32, %arg1: memref<2x1024xf32, #tpu.memory_space<vmem>>, %arg2: memref<1024x128xf32, #tpu.memory_space<vmem>>, %arg3: memref<1x128xf32, #tpu.memory_space<vmem>>, %arg4: memref<128x1024xf32, #tpu.memory_space<vmem>>, %arg5: memref<1x1024xf32, #tpu.memory_space<vmem>>, %arg6: memref<2x1024xf32, #tpu.memory_space<vmem>>, %arg7: memref<2x128xf32, #tpu.memory_space<vmem>>) attributes {dimension_semantics = [#tpu.dimension_semantics<parallel>], iteration_bounds = array<i64: 1>, scalar_prefetch = 0 : i64, scratch_operands = 0 : i64, tpu.core_type = #tpu.core_type<tc>, window_params = [{transform_indices = @transform_0, window_bounds = array<i64: 2, 1024>}, {pipeline_mode = #tpu.pipeline_mode<synchronous>, transform_indices = @transform_1, window_bounds = array<i64: 1024, 128>}, {pipeline_mode = #tpu.pipeline_mode<synchronous>, transform_indices = @transform_2, window_bounds = array<i64: 1, 128>}, {pipeline_mode = #tpu.pipeline_mode<synchronous>, transform_indices = @transform_3, window_bounds = array<i64: 128, 1024>}, {pipeline_mode = #tpu.pipeline_mode<synchronous>, transform_indices = @transform_4, window_bounds = array<i64: 1, 1024>}, {transform_indices = @transform_5, window_bounds = array<i64: 2, 1024>}, {transform_indices = @transform_6, window_bounds = array<i64: 2, 128>}]} {
    %c0 = arith.constant 0 : index
    %c0_0 = arith.constant 0 : index
    %0 = vector.load %arg1[%c0, %c0_0] : memref<2x1024xf32, #tpu.memory_space<vmem>>, vector<2x1024xf32>
    %c0_1 = arith.constant 0 : index
    %c0_2 = arith.constant 0 : index
    %1 = vector.load %arg2[%c0_1, %c0_2] : memref<1024x128xf32, #tpu.memory_space<vmem>>, vector<1024x128xf32>
    %cst = arith.constant dense<0.000000e+00> : vector<2x128xf32>
    %2 = tpu.matmul %0, %1, %cst {dimension_numbers = #tpu.dot_dimension_numbers<[1], [0], [0], [1], [0, 0, 1, 1], [], []>} : vector<2x1024xf32>, vector<1024x128xf32>, vector<2x128xf32> -> vector<2x128xf32>
    %c0_3 = arith.constant 0 : index
    %c0_4 = arith.constant 0 : index
    %3 = vector.load %arg3[%c0_3, %c0_4] : memref<1x128xf32, #tpu.memory_space<vmem>>, vector<1x128xf32>
    %4 = vector.broadcast %3 : vector<1x128xf32> to vector<2x128xf32>
    %5 = arith.addf %2, %4 : vector<2x128xf32>
    %c0_5 = arith.constant 0 : index
    %c0_6 = arith.constant 0 : index
    %6 = vector.load %arg7[%c0_5, %c0_6] : memref<2x128xf32, #tpu.memory_space<vmem>>, vector<2x128xf32>
    tpu.vector_store %arg7[%c0_5, %c0_6], %5 {strides = array<i32>} : memref<2x128xf32, #tpu.memory_space<vmem>>, vector<2x128xf32>,
    %c0_7 = arith.constant 0 : index
    %c0_8 = arith.constant 0 : index
    %7 = vector.load %arg4[%c0_7, %c0_8] : memref<128x1024xf32, #tpu.memory_space<vmem>>, vector<128x1024xf32>
    %cst_9 = arith.constant dense<0.000000e+00> : vector<2x1024xf32>
    %8 = tpu.matmul %5, %7, %cst_9 {dimension_numbers = #tpu.dot_dimension_numbers<[1], [0], [0], [1], [0, 0, 1, 1], [], []>} : vector<2x128xf32>, vector<128x1024xf32>, vector<2x1024xf32> -> vector<2x1024xf32>
    %c0_10 = arith.constant 0 : index
    %c0_11 = arith.constant 0 : index
    %9 = vector.load %arg5[%c0_10, %c0_11] : memref<1x1024xf32, #tpu.memory_space<vmem>>, vector<1x1024xf32>
    %10 = vector.broadcast %9 : vector<1x1024xf32> to vector<2x1024xf32>
    %11 = arith.addf %8, %10 : vector<2x1024xf32>
    %c0_12 = arith.constant 0 : index
    %c0_13 = arith.constant 0 : index
    %12 = vector.load %arg6[%c0_12, %c0_13] : memref<2x1024xf32, #tpu.memory_space<vmem>>, vector<2x1024xf32>
    tpu.vector_store %arg6[%c0_12, %c0_13], %11 {strides = array<i32>} : memref<2x1024xf32, #tpu.memory_space<vmem>>, vector<2x1024xf32>,
    return
  }
  func.func @transform_0(%arg0: i32) -> (i32, i32) {
    %c0_i32 = arith.constant 0 : i32
    %c0_i32_0 = arith.constant 0 : i32
    return %arg0, %c0_i32 : i32, i32
  }
  func.func @transform_1(%arg0: i32) -> (i32, i32) {
    %c0_i32 = arith.constant 0 : i32
    %c0_i32_0 = arith.constant 0 : i32
    %c0_i32_1 = arith.constant 0 : i32
    return %c0_i32, %c0_i32_0 : i32, i32
  }
  func.func @transform_2(%arg0: i32) -> (i32, i32) {
    %c0_i32 = arith.constant 0 : i32
    %c0_i32_0 = arith.constant 0 : i32
    %c0_i32_1 = arith.constant 0 : i32
    return %c0_i32, %c0_i32_0 : i32, i32
  }
  func.func @transform_3(%arg0: i32) -> (i32, i32) {
    %c0_i32 = arith.constant 0 : i32
    %c0_i32_0 = arith.constant 0 : i32
    %c0_i32_1 = arith.constant 0 : i32
    return %c0_i32, %c0_i32_0 : i32, i32
  }
  func.func @transform_4(%arg0: i32) -> (i32, i32) {
    %c0_i32 = arith.constant 0 : i32
    %c0_i32_0 = arith.constant 0 : i32
    %c0_i32_1 = arith.constant 0 : i32
    return %c0_i32, %c0_i32_0 : i32, i32
  }
  func.func @transform_5(%arg0: i32) -> (i32, i32) {
    %c0_i32 = arith.constant 0 : i32
    %c0_i32_0 = arith.constant 0 : i32
    return %arg0, %c0_i32 : i32, i32
  }
  func.func @transform_6(%arg0: i32) -> (i32, i32) {
    %c0_i32 = arith.constant 0 : i32
    %c0_i32_0 = arith.constant 0 : i32
    return %arg0, %c0_i32 : i32, i32
  }
}

</mosaic_0001>

<bundles_post_ra>
// kernel: wmlatent_forward.1
= control target key start
LH: loop header
LB: loop body
LE: loop exit
PB: predicated region body
PF: predicated region fallthrough
CT: control target
= control target key end

     0   :  { %12 = vsyncpa [#allocation3], 0  ;;  %s1354_s0 = inlined_call_operand.vmem [shape: f32[2,1024], index: 0, kind: input, shape index: {}]   ;;  %s1355_s1 = inlined_call_operand.hbm [shape: f32[1024,128], index: 1, kind: input, shape index: {}]   ;;  %s1356_s2 = inlined_call_operand.vmem [shape: f32[1,128], index: 2, kind: input, shape index: {}]   ;;  %s1357_s3 = inlined_call_operand.hbm [shape: f32[128,1024], index: 3, kind: input, shape index: {}]   ;;  %s1358_s4 = inlined_call_operand.vmem [shape: f32[1,1024], index: 4, kind: input, shape index: {}]   ;;  %s1359_s5 = inlined_call_operand.vmem [shape: f32[2,1024], index: 5, kind: output, shape index: {0}]   ;;  %s1360_s6 = inlined_call_operand.hbm [shape: f32[2,128], index: 6, kind: output, shape index: {1}]  }
   0x1   :  { %13 = vsyncpa [#allocation6], 0 }
   0x2   :  { %14 = vsyncpa [#allocation4], 0  ;;  %s1251_s21 = smov [#allocation2]  }
   0x3   :  { %s22_s22 = sshll.u32 %s1251_s21, 4  ;;  %s23_s22 = int_to_ptr.vmem [resolvable:$true] %s22_s22 }
   0x4   :  { %s1193_s23 = scalar_lea.vmem %s23_s22, 16384  ;;  %p1198_p1 = scmp.lt.s32.totalorder %s23_s22, %s23_s22 }
   0x5   :  { %p1194_p0 = scmp.ne.s32.totalorder %s23_s22, %s1193_s23  ;;  %p1199_p2 = scmp.lt.s32.totalorder %s1193_s23, %s1193_s23 }
   0x7   :  { %p1200_p3 = por %p1199_p2, %p1198_p1 }
   0x9   :  { %p1201_p4 = pnand %p1200_p3, %p1194_p0 }
   0xb   :  { %1204 = shalt.err (!%p1201_p4)
}
   0xc   :  { %s1252_s24 = smov 128   ;;  %s1253_s25 = smov 8  }
   0xd   :  { %28 = dma.hbm_to_vmem [thread:$0]  %s1355_s1, 16384, %s23_s22, [#allocation3], %s1252_s24, %s1252_s24, %s1253_s25  }
   0xe   :  { %s1254_s28 = smov [#allocation5]  }
   0xf   :  { %s36_s29 = sshll.u32 %s1254_s28, 4  ;;  %s37_s29 = int_to_ptr.vmem [resolvable:$true] %s36_s29 }
  0x10   :  { %s1213_s30 = scalar_lea.vmem %s37_s29, 16384  ;;  %p1218_p6 = scmp.lt.s32.totalorder %s37_s29, %s37_s29 }
  0x11   :  { %p1214_p5 = scmp.ne.s32.totalorder %s37_s29, %s1213_s30  ;;  %p1219_p7 = scmp.lt.s32.totalorder %s1213_s30, %s1213_s30 }
  0x13   :  { %p1220_p8 = por %p1219_p7, %p1218_p6 }
  0x15   :  { %p1221_p9 = pnand %p1220_p8, %p1214_p5 }
  0x17   :  { %1224 = shalt.err (!%p1221_p9)
}
  0x18   :  { %s1255_s7 = smov 1024   ;;  %s1256_s8 = smov 64  }
  0x19   :  { %42 = dma.hbm_to_vmem [thread:$0]  %s1357_s3, 16384, %s37_s29, [#allocation6], %s1255_s7, %s1255_s7, %s1256_s8  }
  0x1a   :  { %1245 = dma.done.wait [#allocation3], 16384  }
  0x1b   :  { %1246 = vsyncadd [#allocation3], 4294950912 }
  0x1c   :  { %1247 = dma.done.wait [#allocation6], 16384  }
  0x1d   :  { %1248 = vsyncadd [#allocation6], 4294950912  ;;  %v84_v0 = vld [vmem:[#allocation2 + $0xf8] sm:$0xff]  ;;  %v83_v4 = vld [vmem:[#allocation2 + $0xf0] sm:$0xff]  ;;  %v1257_v30 = vmov 1983009808   ;;  %v194_v32 = vlaneseq }
  0x1e   :  { %v116_v1 = vld [vmem:[#allocation2 + $0x1f8] sm:$0xff]  ;;  %1034 = vmatprep.subr.mxu0 %v84_v0  ;;  %v115_v5 = vld [vmem:[#allocation2 + $0x1f0] sm:$0xff]  ;;  %v82_v8 = vld [vmem:[#allocation2 + $0xe8] sm:$0xff]  ;;  %v192_v31 = vunpack.c.l.s4 %v1257_v30 }
  0x1f   :  { %v68_v2 = vld [vmem:[#allocation2 + $0x78] sm:$0xff]  ;;  %1069 = vmatprep.subr.mxu1 %v116_v1  ;;  %v67_v6 = vld [vmem:[#allocation2 + $0x70] sm:$0xff]  ;;  %v114_v9 = vld [vmem:[#allocation2 + $0x1e8] sm:$0xff]  ;;  %v1301_v42 = vshrl.u32 %v194_v32, 7 }
  0x20   :  { %v100_v3 = vld [vmem:[#allocation2 + $0x178] sm:$0xff]  ;;  %1035 = vmatpush3.msra.mxu0 %v68_v2  ;;  %v99_v7 = vld [vmem:[#allocation2 + $0x170] sm:$0xff]  ;;  %v66_v10 = vld [vmem:[#allocation2 + $0x68] sm:$0xff]  ;;  %v193_v41 = vunpack.c.0.s8 %v192_v31 }
  0x21   :  { %1070 = vmatpush3.msra.mxu1 %v100_v3  ;;  %1036 = vmatprep.subr.mxu0 %v83_v4  ;;  %v98_v11 = vld [vmem:[#allocation2 + $0x168] sm:$0xff]  ;;  %v81_v12 = vld [vmem:[#allocation2 + $0xe0] sm:$0xff]  ;;  %v80_v16 = vld [vmem:[#allocation2 + $0xd8] sm:$0xff] }
  0x22   :  { %1071 = vmatprep.subr.mxu1 %v115_v5  ;;  %1037 = vmatpush3.msra.mxu0 %v67_v6  ;;  %v113_v13 = vld [vmem:[#allocation2 + $0x1e0] sm:$0xff]  ;;  %v112_v17 = vld [vmem:[#allocation2 + $0x1d8] sm:$0xff]  ;;  %v79_v20 = vld [vmem:[#allocation2 + $0xd0] sm:$0xff]  ;;  %v1304_v51 = vsub.s32 %v193_v41, %v1301_v42 }
  0x23   :  { %1072 = vmatpush3.msra.mxu1 %v99_v7  ;;  %1038 = vmatprep.subr.mxu0 %v82_v8  ;;  %v65_v14 = vld [vmem:[#allocation2 + $0x60] sm:$0xff]  ;;  %v64_v18 = vld [vmem:[#allocation2 + $0x58] sm:$0xff]  ;;  %v111_v21 = vld [vmem:[#allocation2 + $0x1d0] sm:$0xff] }
  0x24   :  { %1073 = vmatprep.subr.mxu1 %v114_v9  ;;  %v97_v15 = vld [vmem:[#allocation2 + $0x160] sm:$0xff]  ;;  %1039 = vmatpush3.msra.mxu0 %v66_v10  ;;  %v96_v19 = vld [vmem:[#allocation2 + $0x158] sm:$0xff]  ;;  %v63_v22 = vld [vmem:[#allocation2 + $0x50] sm:$0xff] }
  0x25   :  { %1074 = vmatpush3.msra.mxu1 %v98_v11  ;;  %1040 = vmatprep.subr.mxu0 %v81_v12  ;;  %v95_v23 = vld [vmem:[#allocation2 + $0x150] sm:$0xff]  ;;  %v78_v24 = vld [vmem:[#allocation2 + $0xc8] sm:$0xff]  ;;  %v77_v28 = vld [vmem:[#allocation2 + $0xc0] sm:$0xff] }
  0x26   :  { %1075 = vmatprep.subr.mxu1 %v113_v13  ;;  %1041 = vmatpush3.msra.mxu0 %v65_v14  ;;  %v110_v25 = vld [vmem:[#allocation2 + $0x1c8] sm:$0xff]  ;;  %v109_v29 = vld [vmem:[#allocation2 + $0x1c0] sm:$0xff]  ;;  %v76_v35 = vld [vmem:[#allocation2 + $0xb8] sm:$0xff] }
  0x27   :  { %1076 = vmatpush3.msra.mxu1 %v97_v15  ;;  %1042 = vmatprep.subr.mxu0 %v80_v16  ;;  %v62_v26 = vld [vmem:[#allocation2 + $0x48] sm:$0xff]  ;;  %v61_v33 = vld [vmem:[#allocation2 + $0x40] sm:$0xff]  ;;  %v108_v36 = vld [vmem:[#allocation2 + $0x1b8] sm:$0xff] }
  0x28   :  { %1077 = vmatprep.subr.mxu1 %v112_v17  ;;  %1043 = vmatpush3.msra.mxu0 %v64_v18  ;;  %v94_v27 = vld [vmem:[#allocation2 + $0x148] sm:$0xff]  ;;  %v93_v34 = vld [vmem:[#allocation2 + $0x140] sm:$0xff]  ;;  %v60_v37 = vld [vmem:[#allocation2 + $0x38] sm:$0xff] }
  0x29   :  { %1078 = vmatpush3.msra.mxu1 %v96_v19  ;;  %1044 = vmatprep.subr.mxu0 %v79_v20  ;;  %v92_v38 = vld [vmem:[#allocation2 + $0x138] sm:$0xff]  ;;  %v75_v39 = vld [vmem:[#allocation2 + $0xb0] sm:$0xff]  ;;  %v74_v45 = vld [vmem:[#allocation2 + $0xa8] sm:$0xff] }
  0x2a   :  { %1079 = vmatprep.subr.mxu1 %v111_v21  ;;  %1045 = vmatpush3.msra.mxu0 %v63_v22  ;;  %v107_v40 = vld [vmem:[#allocation2 + $0x1b0] sm:$0xff]  ;;  %v106_v46 = vld [vmem:[#allocation2 + $0x1a8] sm:$0xff]  ;;  %v73_v49 = vld [vmem:[#allocation2 + $0xa0] sm:$0xff] }
  0x2b   :  { %1080 = vmatpush3.msra.mxu1 %v95_v23  ;;  %1046 = vmatprep.subr.mxu0 %v78_v24  ;;  %v59_v43 = vld [vmem:[#allocation2 + $0x30] sm:$0xff]  ;;  %v58_v47 = vld [vmem:[#allocation2 + $0x28] sm:$0xff]  ;;  %v105_v50 = vld [vmem:[#allocation2 + $0x1a0] sm:$0xff] }
  0x2c   :  { %1081 = vmatprep.subr.mxu1 %v110_v25  ;;  %1047 = vmatpush3.msra.mxu0 %v62_v26  ;;  %v91_v44 = vld [vmem:[#allocation2 + $0x130] sm:$0xff]  ;;  %v90_v48 = vld [vmem:[#allocation2 + $0x128] sm:$0xff]  ;;  %v57_v52 = vld [vmem:[#allocation2 + $0x20] sm:$0xff] }
  0x2d   :  { %1082 = vmatpush3.msra.mxu1 %v94_v27  ;;  %1048 = vmatprep.subr.mxu0 %v77_v28  ;;  %v89_v53 = vld [vmem:[#allocation2 + $0x120] sm:$0xff]  ;;  %v72_v55 = vld [vmem:[#allocation2 + $0x98] sm:$0xff]  ;;  %v71_v60 = vld [vmem:[#allocation2 + $0x90] sm:$0xff] }
  0x2e   :  { %1083 = vmatprep.subr.mxu1 %v109_v29  ;;  %1049 = vmatpush3.msra.mxu0 %v61_v33  ;;  %v51_v54 = vld [vmem:[%s1354_s0] sm:$0xff]  ;;  %v104_v56 = vld [vmem:[#allocation2 + $0x198] sm:$0xff]  ;;  %v103_v61 = vld [vmem:[#allocation2 + $0x190] sm:$0xff] }
  0x2f   :  { %1084 = vmatpush3.msra.mxu1 %v93_v34  ;;  %1050 = vmatprep.subr.mxu0 %v76_v35  ;;  %v190_v57 = vcombine.high %v51_v54, %v51_v54  ;;  %v56_v58 = vld [vmem:[#allocation2 + $0x18] sm:$0xff]  ;;  %v197_v62 = vrot.slane %v51_v54, %v1304_v51  ;;  %v55_v63 = vld [vmem:[#allocation2 + $0x10] sm:$0xff]  ;;  %v70_v1 = vld [vmem:[#allocation2 + $0x88] sm:$0xff] }
  0x30   :  { %1085 = vmatprep.subr.mxu1 %v108_v36  ;;  %1051 = vmatpush3.msra.mxu0 %v60_v37  ;;  %v88_v59 = vld [vmem:[#allocation2 + $0x118] sm:$0xff]  ;;  %v87_v0 = vld [vmem:[#allocation2 + $0x110] sm:$0xff]  ;;  %v102_v2 = vld [vmem:[#allocation2 + $0x188] sm:$0xff] }
  0x31   :  { %1086 = vmatpush3.msra.mxu1 %v92_v38  ;;  %1052 = vmatprep.subr.mxu0 %v75_v39  ;;  %v204_v3 = vrot.slane %v190_v57, %v1304_v51  ;;  %v54_v4 = vld [vmem:[#allocation2 + $0x8] sm:$0xff]  ;;  %v69_v6 = vld [vmem:[#allocation2 + $0x80] sm:$0xff]  ;;  %v205_v8 = vcombine.high %v197_v62, %v197_v62  ;;  %v148_v12 = vld [vmem:[#allocation2 + $0x2f8] sm:$0xff] }
  0x32   :  { %1087 = vmatprep.subr.mxu1 %v107_v40  ;;  %1053 = vmatpush3.msra.mxu0 %v59_v43  ;;  %v86_v5 = vld [vmem:[#allocation2 + $0x108] sm:$0xff]  ;;  %v101_v7 = vld [vmem:[#allocation2 + $0x180] sm:$0xff]  ;;  %v180_v13 = vld [vmem:[#allocation2 + $0x3f8] sm:$0xff] }
  0x33   :  { %1088 = vmatpush3.msra.mxu1 %v91_v44  ;;  %1054 = vmatprep.subr.mxu0 %v74_v45  ;;  %v53_v9 = vld [vmem:[#allocation2] sm:$0xff]  ;;  %v206_v11 = vcombine.high %v204_v3, %v204_v3  ;;  %v132_v14 = vld [vmem:[#allocation2 + $0x278] sm:$0xff]  ;;  %v147_v16 = vld [vmem:[#allocation2 + $0x2f0] sm:$0xff] }
  0x34   :  { %1089 = vmatprep.subr.mxu1 %v106_v46  ;;  %1055 = vmatpush3.msra.mxu0 %v58_v47  ;;  %v85_v10 = vld [vmem:[#allocation2 + $0x100] sm:$0xff]  ;;  %v164_v15 = vld [vmem:[#allocation2 + $0x378] sm:$0xff]  ;;  %v179_v17 = vld [vmem:[#allocation2 + $0x3f0] sm:$0xff] }
  0x35   :  { %1090 = vmatpush3.msra.mxu1 %v90_v48  ;;  %1056 = vmatprep.subr.mxu0 %v73_v49  ;;  %v131_v18 = vld [vmem:[#allocation2 + $0x270] sm:$0xff]  ;;  %v146_v20 = vld [vmem:[#allocation2 + $0x2e8] sm:$0xff]  ;;  %v145_v24 = vld [vmem:[#allocation2 + $0x2e0] sm:$0xff] }
  0x36   :  { %1091 = vmatprep.subr.mxu1 %v105_v50  ;;  %1057 = vmatpush3.msra.mxu0 %v57_v52  ;;  %v163_v19 = vld [vmem:[#allocation2 + $0x370] sm:$0xff]  ;;  %v178_v21 = vld [vmem:[#allocation2 + $0x3e8] sm:$0xff]  ;;  %v177_v25 = vld [vmem:[#allocation2 + $0x3e0] sm:$0xff] }
  0x37   :  { %1092 = vmatpush3.msra.mxu1 %v89_v53  ;;  %1058 = vmatprep.subr.mxu0 %v72_v55  ;;  %v130_v22 = vld [vmem:[#allocation2 + $0x268] sm:$0xff]  ;;  %v129_v26 = vld [vmem:[#allocation2 + $0x260] sm:$0xff]  ;;  %v144_v28 = vld [vmem:[#allocation2 + $0x2d8] sm:$0xff] }
  0x38   :  { %1093 = vmatprep.subr.mxu1 %v104_v56  ;;  %1059 = vmatpush3.msra.mxu0 %v56_v58  ;;  %v162_v23 = vld [vmem:[#allocation2 + $0x368] sm:$0xff]  ;;  %v161_v27 = vld [vmem:[#allocation2 + $0x360] sm:$0xff]  ;;  %v176_v29 = vld [vmem:[#allocation2 + $0x3d8] sm:$0xff] }
  0x39   :  { %1094 = vmatpush3.msra.mxu1 %v88_v59  ;;  %1060 = vmatprep.subr.mxu0 %v71_v60  ;;  %v128_v30 = vld [vmem:[#allocation2 + $0x258] sm:$0xff]  ;;  %v143_v32 = vld [vmem:[#allocation2 + $0x2d0] sm:$0xff]  ;;  %v142_v36 = vld [vmem:[#allocation2 + $0x2c8] sm:$0xff] }
  0x3a   :  { %1095 = vmatprep.subr.mxu1 %v103_v61  ;;  %1061 = vmatpush3.msra.mxu0 %v55_v63  ;;  %v160_v31 = vld [vmem:[#allocation2 + $0x358] sm:$0xff]  ;;  %v175_v33 = vld [vmem:[#allocation2 + $0x3d0] sm:$0xff]  ;;  %v174_v37 = vld [vmem:[#allocation2 + $0x3c8] sm:$0xff] }
  0x3b   :  { %1096 = vmatpush3.msra.mxu1 %v87_v0  ;;  %1062 = vmatprep.subr.mxu0 %v70_v1  ;;  %v127_v34 = vld [vmem:[#allocation2 + $0x250] sm:$0xff]  ;;  %v126_v38 = vld [vmem:[#allocation2 + $0x248] sm:$0xff]  ;;  %v141_v40 = vld [vmem:[#allocation2 + $0x2c0] sm:$0xff] }
  0x3c   :  { %1097 = vmatprep.subr.mxu1 %v102_v2  ;;  %1063 = vmatpush3.msra.mxu0 %v54_v4  ;;  %v159_v35 = vld [vmem:[#allocation2 + $0x350] sm:$0xff]  ;;  %v158_v39 = vld [vmem:[#allocation2 + $0x348] sm:$0xff]  ;;  %v173_v41 = vld [vmem:[#allocation2 + $0x3c0] sm:$0xff] }
  0x3d   :  { %1098 = vmatpush3.msra.mxu1 %v86_v5  ;;  %1064 = vmatprep.subr.mxu0 %v69_v6  ;;  %v125_v43 = vld [vmem:[#allocation2 + $0x240] sm:$0xff]  ;;  %v140_v45 = vld [vmem:[#allocation2 + $0x2b8] sm:$0xff]  ;;  %v139_v49 = vld [vmem:[#allocation2 + $0x2b0] sm:$0xff] }
  0x3e   :  { %1099 = vmatprep.subr.mxu1 %v101_v7  ;;  %1065 = vmatpush3.msra.mxu0 %v53_v9  ;;  %v157_v44 = vld [vmem:[#allocation2 + $0x340] sm:$0xff]  ;;  %v172_v46 = vld [vmem:[#allocation2 + $0x3b8] sm:$0xff]  ;;  %v171_v50 = vld [vmem:[#allocation2 + $0x3b0] sm:$0xff] }
  0x3f   :  { %296 = vmatprep.mubr.f32.mxu0 %v205_v8  ;;  %1100 = vmatpush3.msra.mxu1 %v85_v10  ;;  %v124_v47 = vld [vmem:[#allocation2 + $0x238] sm:$0xff]  ;;  %v123_v52 = vld [vmem:[#allocation2 + $0x230] sm:$0xff]  ;;  %v138_v54 = vld [vmem:[#allocation2 + $0x2a8] sm:$0xff] }
  0x40   :  { %297 = vmatmul.mubr.f32.vlgmr.msra.gmra.mxu0 %v197_v62  ;;  %366 = vmatprep.mubr.f32.mxu1 %v206_v11  ;;  %v156_v48 = vld [vmem:[#allocation2 + $0x338] sm:$0xff]  ;;  %v155_v53 = vld [vmem:[#allocation2 + $0x330] sm:$0xff]  ;;  %v170_v55 = vld [vmem:[#allocation2 + $0x3a8] sm:$0xff] }
  0x41   :  { %1104 = vmatprep.subr.mxu0 %v148_v12  ;;  %1139 = vmatprep.subr.mxu1 %v180_v13  ;;  %v52_v56 = vld [vmem:[%s1354_s0 + $0x8] sm:$0xff]  ;;  %v137_v59 = vld [vmem:[#allocation2 + $0x2a0] sm:$0xff]  ;;  %v136_v0 = vld [vmem:[#allocation2 + $0x298] sm:$0xff] }
  0x42   :  { %367 = vmatmul.mubr.f32.vlgmr.msra.gmra.mxu1 %v204_v3  ;;  %1105 = vmatpush3.msra.mxu0 %v132_v14  ;;  %v122_v57 = vld [vmem:[#allocation2 + $0x228] sm:$0xff]  ;;  %v169_v60 = vld [vmem:[#allocation2 + $0x3a0] sm:$0xff]  ;;  %v207_v63 = vcombine.high %v52_v56, %v52_v56  ;;  %v168_v1 = vld [vmem:[#allocation2 + $0x398] sm:$0xff]  ;;  %v214_v6 = vrot.slane %v52_v56, %v1304_v51 }
  0x43   :  { %1140 = vmatpush3.msra.mxu1 %v164_v15  ;;  %1106 = vmatprep.subr.mxu0 %v147_v16  ;;  %v154_v58 = vld [vmem:[#allocation2 + $0x328] sm:$0xff]  ;;  %v121_v61 = vld [vmem:[#allocation2 + $0x220] sm:$0xff]  ;;  %v120_v2 = vld [vmem:[#allocation2 + $0x218] sm:$0xff] }
  0x44   :  { %1141 = vmatprep.subr.mxu1 %v179_v17  ;;  %1107 = vmatpush3.msra.mxu0 %v131_v18  ;;  %v153_v62 = vld [vmem:[#allocation2 + $0x320] sm:$0xff]  ;;  %v152_v3 = vld [vmem:[#allocation2 + $0x318] sm:$0xff]  ;;  %v135_v4 = vld [vmem:[#allocation2 + $0x290] sm:$0xff]  ;;  %v221_v9 = vrot.slane %v207_v63, %v1304_v51  ;;  %v222_v16 = vcombine.high %v214_v6, %v214_v6 }
  0x45   :  { %1142 = vmatpush3.msra.mxu1 %v163_v19  ;;  %1108 = vmatprep.subr.mxu0 %v146_v20  ;;  %v167_v5 = vld [vmem:[#allocation2 + $0x390] sm:$0xff]  ;;  %v134_v10 = vld [vmem:[#allocation2 + $0x288] sm:$0xff]  ;;  %v133_v14 = vld [vmem:[#allocation2 + $0x280] sm:$0xff] }
  0x46   :  { %1143 = vmatprep.subr.mxu1 %v178_v21  ;;  %1109 = vmatpush3.msra.mxu0 %v130_v22  ;;  %v119_v7 = vld [vmem:[#allocation2 + $0x210] sm:$0xff]  ;;  %v166_v11 = vld [vmem:[#allocation2 + $0x388] sm:$0xff]  ;;  %v165_v15 = vld [vmem:[#allocation2 + $0x380] sm:$0xff]  ;;  %v223_v18 = vcombine.high %v221_v9, %v221_v9 }
  0x47   :  { %1144 = vmatpush3.msra.mxu1 %v162_v23  ;;  %1110 = vmatprep.subr.mxu0 %v145_v24  ;;  %v151_v8 = vld [vmem:[#allocation2 + $0x310] sm:$0xff]  ;;  %v118_v12 = vld [vmem:[#allocation2 + $0x208] sm:$0xff]  ;;  %v117_v17 = vld [vmem:[#allocation2 + $0x200] sm:$0xff] }
  0x48   :  { %1145 = vmatprep.subr.mxu1 %v177_v25  ;;  %1111 = vmatpush3.msra.mxu0 %v129_v26  ;;  %v150_v13 = vld [vmem:[#allocation2 + $0x308] sm:$0xff]  ;;  %v149_v19 = vld [vmem:[#allocation2 + $0x300] sm:$0xff]  ;;  %v636_v21 = vld [vmem:[#allocation5 + $0x3d8] sm:$0xff] }
  0x49   :  { %1146 = vmatpush3.msra.mxu1 %v161_v27  ;;  %1112 = vmatprep.subr.mxu0 %v144_v28  ;;  %v634_v20 = vld [vmem:[#allocation5 + $0x3c8] sm:$0xff]  ;;  %v633_v22 = vld [vmem:[#allocation5 + $0x3c0] sm:$0xff]  ;;  %v635_v23 = vld [vmem:[#allocation5 + $0x3d0] sm:$0xff] }
  0x4a   :  { %1147 = vmatprep.subr.mxu1 %v176_v29  ;;  %1113 = vmatpush3.msra.mxu0 %v128_v30  ;;  %v626_v24 = vld [vmem:[#allocation5 + $0x388] sm:$0xff]  ;;  %v628_v25 = vld [vmem:[#allocation5 + $0x398] sm:$0xff]  ;;  %v625_v26 = vld [vmem:[#allocation5 + $0x380] sm:$0xff] }
  0x4b   :  { %1148 = vmatpush3.msra.mxu1 %v160_v31  ;;  %1114 = vmatprep.subr.mxu0 %v143_v32  ;;  %v627_v27 = vld [vmem:[#allocation5 + $0x390] sm:$0xff]  ;;  %v618_v28 = vld [vmem:[#allocation5 + $0x348] sm:$0xff]  ;;  %v620_v29 = vld [vmem:[#allocation5 + $0x358] sm:$0xff] }
  0x4c   :  { %1149 = vmatprep.subr.mxu1 %v175_v33  ;;  %1115 = vmatpush3.msra.mxu0 %v127_v34  ;;  %v617_v30 = vld [vmem:[#allocation5 + $0x340] sm:$0xff]  ;;  %v619_v31 = vld [vmem:[#allocation5 + $0x350] sm:$0xff]  ;;  %v610_v32 = vld [vmem:[#allocation5 + $0x308] sm:$0xff] }
  0x4d   :  { %1150 = vmatpush3.msra.mxu1 %v159_v35  ;;  %1116 = vmatprep.subr.mxu0 %v142_v36  ;;  %v612_v33 = vld [vmem:[#allocation5 + $0x318] sm:$0xff]  ;;  %v609_v34 = vld [vmem:[#allocation5 + $0x300] sm:$0xff]  ;;  %v611_v35 = vld [vmem:[#allocation5 + $0x310] sm:$0xff] }
  0x4e   :  { %1151 = vmatprep.subr.mxu1 %v174_v37  ;;  %1117 = vmatpush3.msra.mxu0 %v126_v38  ;;  %v602_v36 = vld [vmem:[#allocation5 + $0x2c8] sm:$0xff]  ;;  %v604_v37 = vld [vmem:[#allocation5 + $0x2d8] sm:$0xff]  ;;  %v601_v38 = vld [vmem:[#allocation5 + $0x2c0] sm:$0xff] }
  0x4f   :  { %1152 = vmatpush3.msra.mxu1 %v158_v39  ;;  %1118 = vmatprep.subr.mxu0 %v141_v40  ;;  %v603_v39 = vld [vmem:[#allocation5 + $0x2d0] sm:$0xff]  ;;  %v594_v40 = vld [vmem:[#allocation5 + $0x288] sm:$0xff]  ;;  %v569_v56 = vld [vmem:[#allocation5 + $0x1c0] sm:$0xff] }
  0x50   :  { %1153 = vmatprep.subr.mxu1 %v173_v41  ;;  %1119 = vmatpush3.msra.mxu0 %v125_v43  ;;  %v596_v41 = vld [vmem:[#allocation5 + $0x298] sm:$0xff]  ;;  %v593_v43 = vld [vmem:[#allocation5 + $0x280] sm:$0xff] }
  0x51   :  { %1154 = vmatpush3.msra.mxu1 %v157_v44  ;;  %1120 = vmatprep.subr.mxu0 %v140_v45  ;;  %v595_v44 = vld [vmem:[#allocation5 + $0x290] sm:$0xff]  ;;  %v586_v45 = vld [vmem:[#allocation5 + $0x248] sm:$0xff]  ;;  %v556_v63 = vld [vmem:[#allocation5 + $0x158] sm:$0xff] }
  0x52   :  { %1155 = vmatprep.subr.mxu1 %v172_v46  ;;  %1121 = vmatpush3.msra.mxu0 %v124_v47  ;;  %v588_v46 = vld [vmem:[#allocation5 + $0x258] sm:$0xff]  ;;  %v585_v47 = vld [vmem:[#allocation5 + $0x240] sm:$0xff] }
  0x53   :  { %1156 = vmatpush3.msra.mxu1 %v156_v48  ;;  %1122 = vmatprep.subr.mxu0 %v139_v49  ;;  %v587_v48 = vld [vmem:[#allocation5 + $0x250] sm:$0xff]  ;;  %v578_v49 = vld [vmem:[#allocation5 + $0x208] sm:$0xff] }
  0x54   :  { %1157 = vmatprep.subr.mxu1 %v171_v50  ;;  %1123 = vmatpush3.msra.mxu0 %v123_v52  ;;  %v580_v50 = vld [vmem:[#allocation5 + $0x218] sm:$0xff]  ;;  %v577_v52 = vld [vmem:[#allocation5 + $0x200] sm:$0xff] }
  0x55   :  { %1158 = vmatpush3.msra.mxu1 %v155_v53  ;;  %1124 = vmatprep.subr.mxu0 %v138_v54  ;;  %v579_v53 = vld [vmem:[#allocation5 + $0x210] sm:$0xff]  ;;  %v570_v54 = vld [vmem:[#allocation5 + $0x1c8] sm:$0xff] }
  0x56   :  { %1159 = vmatprep.subr.mxu1 %v170_v55  ;;  %1125 = vmatpush3.msra.mxu0 %v122_v57  ;;  %v572_v55 = vld [vmem:[#allocation5 + $0x1d8] sm:$0xff]  ;;  %v571_v57 = vld [vmem:[#allocation5 + $0x1d0] sm:$0xff] }
  0x57   :  { %1160 = vmatpush3.msra.mxu1 %v154_v58  ;;  %1126 = vmatprep.subr.mxu0 %v137_v59  ;;  %v562_v58 = vld [vmem:[#allocation5 + $0x188] sm:$0xff]  ;;  %v564_v59 = vld [vmem:[#allocation5 + $0x198] sm:$0xff] }
  0x58   :  { %1161 = vmatprep.subr.mxu1 %v169_v60  ;;  %1127 = vmatpush3.msra.mxu0 %v121_v61  ;;  %v561_v60 = vld [vmem:[#allocation5 + $0x180] sm:$0xff]  ;;  %v563_v61 = vld [vmem:[#allocation5 + $0x190] sm:$0xff] }
  0x59   :  { %1162 = vmatpush3.msra.mxu1 %v153_v62  ;;  %1128 = vmatprep.subr.mxu0 %v136_v0  ;;  %v554_v62 = vld [vmem:[#allocation5 + $0x148] sm:$0xff]  ;;  %v553_v0 = vld [vmem:[#allocation5 + $0x140] sm:$0xff] }
  0x5a   :  { %1163 = vmatprep.subr.mxu1 %v168_v1  ;;  %1129 = vmatpush3.msra.mxu0 %v120_v2  ;;  %v555_v1 = vld [vmem:[#allocation5 + $0x150] sm:$0xff]  ;;  %v546_v2 = vld [vmem:[#allocation5 + $0x108] sm:$0xff] }
  0x5b   :  { %1164 = vmatpush3.msra.mxu1 %v152_v3  ;;  %1130 = vmatprep.subr.mxu0 %v135_v4  ;;  %v548_v3 = vld [vmem:[#allocation5 + $0x118] sm:$0xff]  ;;  %v545_v4 = vld [vmem:[#allocation5 + $0x100] sm:$0xff] }
  0x5c   :  { %1165 = vmatprep.subr.mxu1 %v167_v5  ;;  %1131 = vmatpush3.msra.mxu0 %v119_v7  ;;  %v547_v5 = vld [vmem:[#allocation5 + $0x110] sm:$0xff]  ;;  %v540_v7 = vld [vmem:[#allocation5 + $0xd8] sm:$0xff] }
  0x5d   :  { %1166 = vmatpush3.msra.mxu1 %v151_v8  ;;  %1132 = vmatprep.subr.mxu0 %v134_v10  ;;  %v537_v8 = vld [vmem:[#allocation5 + $0xc0] sm:$0xff]  ;;  %v530_v10 = vld [vmem:[#allocation5 + $0x88] sm:$0xff] }
  0x5e   :  { %1167 = vmatprep.subr.mxu1 %v166_v11  ;;  %1133 = vmatpush3.msra.mxu0 %v118_v12  ;;  %v532_v11 = vld [vmem:[#allocation5 + $0x98] sm:$0xff]  ;;  %v529_v12 = vld [vmem:[#allocation5 + $0x80] sm:$0xff] }
  0x5f   :  { %1168 = vmatpush3.msra.mxu1 %v150_v13  ;;  %1134 = vmatprep.subr.mxu0 %v133_v14  ;;  %v531_v13 = vld [vmem:[#allocation5 + $0x90] sm:$0xff]  ;;  %v522_v14 = vld [vmem:[#allocation5 + $0x48] sm:$0xff] }
  0x60   :  { %1169 = vmatprep.subr.mxu1 %v165_v15  ;;  %1135 = vmatpush3.msra.mxu0 %v117_v17  ;;  %v524_v15 = vld [vmem:[#allocation5 + $0x58] sm:$0xff]  ;;  %v523_v17 = vld [vmem:[#allocation5 + $0x50] sm:$0xff] }
  0x61   :  { %436 = vmatprep.mubr.f32.mxu0 %v222_v16  ;;  %1170 = vmatpush3.msra.mxu1 %v149_v19  ;;  %v521_v16 = vld [vmem:[#allocation5 + $0x40] sm:$0xff]  ;;  %v516_v19 = vld [vmem:[#allocation5 + $0x18] sm:$0xff] }
  0x62   :  { %506 = vmatprep.mubr.f32.mxu1 %v223_v18  ;;  %437 = vmatmul.mubr.f32.vlgmr.msra.gmra.mxu0 %v214_v6  ;;  %v538_v6 = vld [vmem:[#allocation5 + $0xc8] sm:$0xff] }
  0x63   :  { %507 = vmatmul.mubr.f32.vlgmr.msra.gmra.mxu1 %v221_v9  ;;  %683 = vmatprep.subr.mxu0 %v634_v20  ;;  %v539_v9 = vld [vmem:[#allocation5 + $0xd0] sm:$0xff]  ;;  %v514_v18 = vld [vmem:[#allocation5 + $0x8] sm:$0xff]  ;;  %v513_v20 = vld [vmem:[#allocation5] sm:$0xff] }
  0x64   :  { %754 = vmatprep.subr.mxu1 %v636_v21  ;;  %684 = vmatpush1.msra.mxu0 %v633_v22  ;;  %v515_v21 = vld [vmem:[#allocation5 + $0x10] sm:$0xff]  ;;  %v638_v22 = vld [vmem:[#allocation5 + $0x3e8] sm:$0xff] }
  0x65   :  { %755 = vmatpush1.msra.mxu1 %v635_v23  ;;  %685 = vmatprep.subr.mxu0 %v626_v24  ;;  %v640_v23 = vld [vmem:[#allocation5 + $0x3f8] sm:$0xff]  ;;  %v1258_v24 = vmov 0.0  }
  0x66   :  { %756 = vmatprep.subr.mxu1 %v628_v25  ;;  %686 = vmatpush1.msra.mxu0 %v625_v26 }
  0x67   :  { %757 = vmatpush1.msra.mxu1 %v627_v27  ;;  %687 = vmatprep.subr.mxu0 %v618_v28 }
  0x68   :  { %758 = vmatprep.subr.mxu1 %v620_v29  ;;  %688 = vmatpush1.msra.mxu0 %v617_v30  ;;  %v1033_v29 = vld [vmem:[%s1356_s2] ss:$0 sm:$0xff]  ;;  %s1259_s2 = smov [#allocation7]  }
  0x69   :  { %759 = vmatpush1.msra.mxu1 %v619_v31  ;;  %689 = vmatprep.subr.mxu0 %v610_v32  ;;  %s1021_s14 = sshll.u32 %s1259_s2, 4  ;;  %s1022_s14 = int_to_ptr.vmem [resolvable:$true] %s1021_s14 }
  0x6a   :  { %760 = vmatprep.subr.mxu1 %v612_v33  ;;  %690 = vmatpush1.msra.mxu0 %v609_v34  ;;  %s1225_s15 = scalar_lea.vmem %s1022_s14, 32  ;;  %p1230_p11 = scmp.lt.s32.totalorder %s1022_s14, %s1022_s14 }
  0x6b   :  { %761 = vmatpush1.msra.mxu1 %v611_v35  ;;  %691 = vmatprep.subr.mxu0 %v602_v36  ;;  %p1226_p10 = scmp.ne.s32.totalorder %s1022_s14, %s1225_s15  ;;  %p1231_p12 = scmp.lt.s32.totalorder %s1225_s15, %s1225_s15 }
  0x6c   :  { %762 = vmatprep.subr.mxu1 %v604_v37  ;;  %692 = vmatpush1.msra.mxu0 %v601_v38 }
  0x6d   :  { %763 = vmatpush1.msra.mxu1 %v603_v39  ;;  %693 = vmatprep.subr.mxu0 %v594_v40  ;;  %p1232_p13 = por %p1231_p12, %p1230_p11 }
  0x6e   :  { %764 = vmatprep.subr.mxu1 %v596_v41  ;;  %694 = vmatpush1.msra.mxu0 %v593_v43  ;;  %v637_v43 = vld [vmem:[#allocation5 + $0x3e0] sm:$0xff] }
  0x6f   :  { %765 = vmatpush1.msra.mxu1 %v595_v44  ;;  %695 = vmatprep.subr.mxu0 %v586_v45  ;;  %v639_v44 = vld [vmem:[#allocation5 + $0x3f0] sm:$0xff]  ;;  %v630_v45 = vld [vmem:[#allocation5 + $0x3a8] sm:$0xff]  ;;  %p1233_p0 = pnand %p1232_p13, %p1226_p10 }
  0x70   :  { %766 = vmatprep.subr.mxu1 %v588_v46  ;;  %696 = vmatpush1.msra.mxu0 %v585_v47  ;;  %v632_v46 = vld [vmem:[#allocation5 + $0x3b8] sm:$0xff]  ;;  %v629_v47 = vld [vmem:[#allocation5 + $0x3a0] sm:$0xff] }
  0x71   :  { %767 = vmatpush1.msra.mxu1 %v587_v48  ;;  %697 = vmatprep.subr.mxu0 %v578_v49  ;;  %v631_v48 = vld [vmem:[#allocation5 + $0x3b0] sm:$0xff]  ;;  %v622_v49 = vld [vmem:[#allocation5 + $0x368] sm:$0xff] }
  0x72   :  { %768 = vmatprep.subr.mxu1 %v580_v50  ;;  %698 = vmatpush1.msra.mxu0 %v577_v52  ;;  %v624_v50 = vld [vmem:[#allocation5 + $0x378] sm:$0xff]  ;;  %v621_v52 = vld [vmem:[#allocation5 + $0x360] sm:$0xff] }
  0x73   :  { %769 = vmatpush1.msra.mxu1 %v579_v53  ;;  %699 = vmatprep.subr.mxu0 %v570_v54  ;;  %v623_v53 = vld [vmem:[#allocation5 + $0x370] sm:$0xff]  ;;  %v614_v54 = vld [vmem:[#allocation5 + $0x328] sm:$0xff] }
  0x74   :  { %770 = vmatprep.subr.mxu1 %v572_v55  ;;  %700 = vmatpush1.msra.mxu0 %v569_v56  ;;  %v616_v55 = vld [vmem:[#allocation5 + $0x338] sm:$0xff]  ;;  %v613_v56 = vld [vmem:[#allocation5 + $0x320] sm:$0xff] }
  0x75   :  { %771 = vmatpush1.msra.mxu1 %v571_v57  ;;  %701 = vmatprep.subr.mxu0 %v562_v58  ;;  %v615_v57 = vld [vmem:[#allocation5 + $0x330] sm:$0xff]  ;;  %v606_v58 = vld [vmem:[#allocation5 + $0x2e8] sm:$0xff] }
  0x76   :  { %772 = vmatprep.subr.mxu1 %v564_v59  ;;  %702 = vmatpush1.msra.mxu0 %v561_v60  ;;  %v608_v59 = vld [vmem:[#allocation5 + $0x2f8] sm:$0xff]  ;;  %v605_v60 = vld [vmem:[#allocation5 + $0x2e0] sm:$0xff] }
  0x77   :  { %773 = vmatpush1.msra.mxu1 %v563_v61  ;;  %703 = vmatprep.subr.mxu0 %v554_v62  ;;  %v607_v61 = vld [vmem:[#allocation5 + $0x2f0] sm:$0xff]  ;;  %v598_v62 = vld [vmem:[#allocation5 + $0x2a8] sm:$0xff] }
  0x78   :  { %774 = vmatprep.subr.mxu1 %v556_v63  ;;  %704 = vmatpush1.msra.mxu0 %v553_v0  ;;  %v600_v63 = vld [vmem:[#allocation5 + $0x2b8] sm:$0xff]  ;;  %v597_v0 = vld [vmem:[#allocation5 + $0x2a0] sm:$0xff] }
  0x79   :  { %775 = vmatpush1.msra.mxu1 %v555_v1  ;;  %705 = vmatprep.subr.mxu0 %v546_v2  ;;  %v599_v1 = vld [vmem:[#allocation5 + $0x2b0] sm:$0xff]  ;;  %v590_v2 = vld [vmem:[#allocation5 + $0x268] sm:$0xff] }
  0x7a   :  { %776 = vmatprep.subr.mxu1 %v548_v3  ;;  %706 = vmatpush1.msra.mxu0 %v545_v4  ;;  %v592_v3 = vld [vmem:[#allocation5 + $0x278] sm:$0xff]  ;;  %v589_v4 = vld [vmem:[#allocation5 + $0x260] sm:$0xff] }
  0x7b   :  { %777 = vmatpush1.msra.mxu1 %v547_v5  ;;  %707 = vmatprep.subr.mxu0 %v538_v6  ;;  %v591_v5 = vld [vmem:[#allocation5 + $0x270] sm:$0xff]  ;;  %v582_v6 = vld [vmem:[#allocation5 + $0x228] sm:$0xff] }
  0x7c   :  { %778 = vmatprep.subr.mxu1 %v540_v7  ;;  %708 = vmatpush1.msra.mxu0 %v537_v8  ;;  %v584_v7 = vld [vmem:[#allocation5 + $0x238] sm:$0xff]  ;;  %v581_v8 = vld [vmem:[#allocation5 + $0x220] sm:$0xff] }
  0x7d   :  { %779 = vmatpush1.msra.mxu1 %v539_v9  ;;  %709 = vmatprep.subr.mxu0 %v530_v10  ;;  %v583_v9 = vld [vmem:[#allocation5 + $0x230] sm:$0xff]  ;;  %v574_v10 = vld [vmem:[#allocation5 + $0x1e8] sm:$0xff] }
  0x7e   :  { %780 = vmatprep.subr.mxu1 %v532_v11  ;;  %710 = vmatpush1.msra.mxu0 %v529_v12  ;;  %v576_v11 = vld [vmem:[#allocation5 + $0x1f8] sm:$0xff]  ;;  %v573_v12 = vld [vmem:[#allocation5 + $0x1e0] sm:$0xff] }
  0x7f   :  { %781 = vmatpush1.msra.mxu1 %v531_v13  ;;  %711 = vmatprep.subr.mxu0 %v522_v14  ;;  %v575_v13 = vld [vmem:[#allocation5 + $0x1f0] sm:$0xff]  ;;  %v566_v14 = vld [vmem:[#allocation5 + $0x1a8] sm:$0xff] }
  0x80   :  { %782 = vmatprep.subr.mxu1 %v524_v15  ;;  %712 = vmatpush1.msra.mxu0 %v521_v16  ;;  %v568_v15 = vld [vmem:[#allocation5 + $0x1b8] sm:$0xff]  ;;  %v565_v16 = vld [vmem:[#allocation5 + $0x1a0] sm:$0xff] }
  0x81   :  { %783 = vmatpush1.msra.mxu1 %v523_v17  ;;  %713 = vmatprep.subr.mxu0 %v514_v18  ;;  %v567_v17 = vld [vmem:[#allocation5 + $0x1b0] sm:$0xff]  ;;  %v558_v18 = vld [vmem:[#allocation5 + $0x168] sm:$0xff] }
  0x82   :  { %784 = vmatprep.subr.mxu1 %v516_v19  ;;  %714 = vmatpush1.msra.mxu0 %v513_v20  ;;  %v560_v19 = vld [vmem:[#allocation5 + $0x178] sm:$0xff]  ;;  %v557_v20 = vld [vmem:[#allocation5 + $0x160] sm:$0xff] }
  0x83   :  { %785 = vmatpush1.msra.mxu1 %v515_v21  ;;  %747 = vmatprep.mubr.f32.mxu0 %v1258_v24  ;;  %v559_v21 = vld [vmem:[#allocation5 + $0x170] sm:$0xff] }
  0x84   :  { %818 = vmatprep.mubr.f32.mxu1 %v1258_v24  ;;  %825 = vmatprep.subr.mxu0 %v638_v22  ;;  %v550_v22 = vld [vmem:[#allocation5 + $0x128] sm:$0xff] }
  0x85   :  { %896 = vmatprep.subr.mxu1 %v640_v23  ;;  %v552_v23 = vld [vmem:[#allocation5 + $0x138] sm:$0xff] }
 0x100   :  { %v1066_v25 = vpop.f32.mrf.mxu0 }
 0x102   :  { %v1101_v26 = vpop.f32.mrf.mxu1  ;;  %v1067_v27 = vpop.f32.mrf.mxu0 }
 0x103   :  { %v1068_v28 = vadd.f32 %v1067_v27, %v1066_v25  ;;  %v549_v25 = vld [vmem:[#allocation5 + $0x120] sm:$0xff]  ;;  %v542_v27 = vld [vmem:[#allocation5 + $0xe8] sm:$0xff] }
 0x104   :  { %v1102_v30 = vpop.f32.mrf.mxu1 }
 0x105   :  { %v299_v31 = vadd.f32 %v1068_v28, %v1033_v29  ;;  %v1103_v32 = vadd.f32 %v1102_v30, %v1101_v26  ;;  %v551_v26 = vld [vmem:[#allocation5 + $0x130] sm:$0xff]  ;;  %v544_v28 = vld [vmem:[#allocation5 + $0xf8] sm:$0xff]  ;;  %v541_v29 = vld [vmem:[#allocation5 + $0xe0] sm:$0xff] }
 0x106   :  { %v543_v30 = vld [vmem:[#allocation5 + $0xf0] sm:$0xff] }
 0x107   :  { %v369_v37 = vadd.f32 %v1103_v32, %v299_v31  ;;  %v534_v31 = vld [vmem:[#allocation5 + $0xa8] sm:$0xff]  ;;  %v536_v32 = vld [vmem:[#allocation5 + $0xb8] sm:$0xff] }
 0x122   :  { %v1136_v33 = vpop.f32.mrf.mxu0 }
 0x123   :  { %v1171_v34 = vpop.f32.mrf.mxu1 }
 0x124   :  { %v1137_v35 = vpop.f32.mrf.mxu0 }
 0x125   :  { %v1172_v36 = vpop.f32.mrf.mxu1  ;;  %v1138_v38 = vadd.f32 %v1137_v35, %v1136_v33  ;;  %v533_v33 = vld [vmem:[#allocation5 + $0xa0] sm:$0xff]  ;;  %v526_v35 = vld [vmem:[#allocation5 + $0x68] sm:$0xff] }
 0x126   :  { %v1173_v40 = vadd.f32 %v1172_v36, %v1171_v34  ;;  %v535_v34 = vld [vmem:[#allocation5 + $0xb0] sm:$0xff]  ;;  %v528_v36 = vld [vmem:[#allocation5 + $0x78] sm:$0xff] }
 0x127   :  { %v439_v39 = vadd.f32 %v1138_v38, %v369_v37  ;;  %v525_v37 = vld [vmem:[#allocation5 + $0x60] sm:$0xff]  ;;  %v527_v38 = vld [vmem:[#allocation5 + $0x70] sm:$0xff] }
 0x129   :  { %v1321_v41 = vadd.f32 %v1173_v40, %v439_v39  ;;  %v518_v39 = vld [vmem:[#allocation5 + $0x28] sm:$0xff]  ;;  %v520_v40 = vld [vmem:[#allocation5 + $0x38] sm:$0xff] }
 0x12b   :  { %512 = vst [vmem:[#allocation7] sm:$0x3] %v1321_v41  ;;  %748 = vmatmul.mubr.f32.vlgmr.msra.gmra.mxu0 %v1321_v41  ;;  %819 = vmatmul.mubr.f32.vlgmr.msra.gmra.mxu1 %v1321_v41 }
 0x12c   :  { %826 = vmatpush1.msra.mxu0 %v637_v43  ;;  %897 = vmatpush1.msra.mxu1 %v639_v44  ;;  %v517_v43 = vld [vmem:[#allocation5 + $0x20] sm:$0xff]  ;;  %v519_v44 = vld [vmem:[#allocation5 + $0x30] sm:$0xff] }
 0x12d   :  { %827 = vmatprep.subr.mxu0 %v630_v45  ;;  %898 = vmatprep.subr.mxu1 %v632_v46 }
 0x12e   :  { %828 = vmatpush1.msra.mxu0 %v629_v47  ;;  %899 = vmatpush1.msra.mxu1 %v631_v48 }
 0x12f   :  { %829 = vmatprep.subr.mxu0 %v622_v49  ;;  %900 = vmatprep.subr.mxu1 %v624_v50 }
 0x130   :  { %830 = vmatpush1.msra.mxu0 %v621_v52  ;;  %901 = vmatpush1.msra.mxu1 %v623_v53 }
 0x131   :  { %831 = vmatprep.subr.mxu0 %v614_v54  ;;  %902 = vmatprep.subr.mxu1 %v616_v55 }
 0x132   :  { %832 = vmatpush1.msra.mxu0 %v613_v56  ;;  %903 = vmatpush1.msra.mxu1 %v615_v57 }
 0x133   :  { %833 = vmatprep.subr.mxu0 %v606_v58  ;;  %904 = vmatprep.subr.mxu1 %v608_v59 }
 0x134   :  { %834 = vmatpush1.msra.mxu0 %v605_v60  ;;  %905 = vmatpush1.msra.mxu1 %v607_v61 }
 0x135   :  { %835 = vmatprep.subr.mxu0 %v598_v62  ;;  %906 = vmatprep.subr.mxu1 %v600_v63 }
 0x136   :  { %836 = vmatpush1.msra.mxu0 %v597_v0  ;;  %907 = vmatpush1.msra.mxu1 %v599_v1 }
 0x137   :  { %837 = vmatprep.subr.mxu0 %v590_v2  ;;  %908 = vmatprep.subr.mxu1 %v592_v3 }
 0x138   :  { %838 = vmatpush1.msra.mxu0 %v589_v4  ;;  %909 = vmatpush1.msra.mxu1 %v591_v5 }
 0x139   :  { %839 = vmatprep.subr.mxu0 %v582_v6  ;;  %910 = vmatprep.subr.mxu1 %v584_v7 }
 0x13a   :  { %840 = vmatpush1.msra.mxu0 %v581_v8  ;;  %911 = vmatpush1.msra.mxu1 %v583_v9 }
 0x13b   :  { %841 = vmatprep.subr.mxu0 %v574_v10  ;;  %912 = vmatprep.subr.mxu1 %v576_v11 }
 0x13c   :  { %842 = vmatpush1.msra.mxu0 %v573_v12  ;;  %913 = vmatpush1.msra.mxu1 %v575_v13 }
 0x13d   :  { %843 = vmatprep.subr.mxu0 %v566_v14  ;;  %914 = vmatprep.subr.mxu1 %v568_v15 }
 0x13e   :  { %844 = vmatpush1.msra.mxu0 %v565_v16  ;;  %915 = vmatpush1.msra.mxu1 %v567_v17 }
 0x13f   :  { %845 = vmatprep.subr.mxu0 %v558_v18  ;;  %916 = vmatprep.subr.mxu1 %v560_v19 }
 0x140   :  { %846 = vmatpush1.msra.mxu0 %v557_v20  ;;  %917 = vmatpush1.msra.mxu1 %v559_v21 }
 0x141   :  { %847 = vmatprep.subr.mxu0 %v550_v22  ;;  %918 = vmatprep.subr.mxu1 %v552_v23 }
 0x142   :  { %848 = vmatpush1.msra.mxu0 %v549_v25  ;;  %919 = vmatpush1.msra.mxu1 %v551_v26 }
 0x143   :  { %849 = vmatprep.subr.mxu0 %v542_v27  ;;  %920 = vmatprep.subr.mxu1 %v544_v28 }
 0x144   :  { %850 = vmatpush1.msra.mxu0 %v541_v29  ;;  %921 = vmatpush1.msra.mxu1 %v543_v30 }
 0x145   :  { %851 = vmatprep.subr.mxu0 %v534_v31  ;;  %922 = vmatprep.subr.mxu1 %v536_v32 }
 0x146   :  { %852 = vmatpush1.msra.mxu0 %v533_v33  ;;  %923 = vmatpush1.msra.mxu1 %v535_v34 }
 0x147   :  { %853 = vmatprep.subr.mxu0 %v526_v35  ;;  %924 = vmatprep.subr.mxu1 %v528_v36 }
 0x148   :  { %854 = vmatpush1.msra.mxu0 %v525_v37  ;;  %925 = vmatpush1.msra.mxu1 %v527_v38 }
 0x149   :  { %855 = vmatprep.subr.mxu0 %v518_v39  ;;  %926 = vmatprep.subr.mxu1 %v520_v40 }
 0x14a   :  { %856 = vmatpush1.msra.mxu0 %v517_v43  ;;  %889 = vmatprep.mubr.f32.mxu0 %v1258_v24 }
 0x14b   :  { %927 = vmatpush1.msra.mxu1 %v519_v44  ;;  %960 = vmatprep.mubr.f32.mxu1 %v1258_v24 }
 0x14c   :  { %890 = vmatmul.mubr.f32.vlgmr.msra.gmra.mxu0 %v1321_v41  ;;  %961 = vmatmul.mubr.f32.vlgmr.msra.gmra.mxu1 %v1321_v41 }
 0x14d   :  { %1236 = shalt.err (!%p1233_p0)
}
 0x14e   :  { %1024 = dma.vmem_to_hbm [thread:$0]  %s1022_s14, 32, %s1360_s6, [#allocation4]   ;;  %v645_v24 = vsub.s32 0, %v1301_v42  ;;  %v653_v45 = vsub.s32 2, %v1301_v42  ;;  %v649_v41 = vsub.s32 1, %v1301_v42  ;;  %v657_v46 = vsub.s32 3, %v1301_v42 }
 0x14f   :  { %v641_v47 = vld [vmem:[%s1358_s4] sm:$0xff]  ;;  %v661_v2 = vsub.s32 4, %v1301_v42  ;;  %v669_v3 = vsub.s32 6, %v1301_v42  ;;  %v665_v4 = vsub.s32 5, %v1301_v42  ;;  %v673_v5 = vsub.s32 7, %v1301_v42 }
 0x150   :  { %v646_v48 = vrot.slane %v641_v47, %v645_v24  ;;  %v654_v49 = vrot.slane %v641_v47, %v653_v45  ;;  %v650_v50 = vrot.slane %v641_v47, %v649_v41  ;;  %v658_v52 = vrot.slane %v641_v47, %v657_v46 }
 0x151   :  { %v662_v6 = vrot.slane %v641_v47, %v661_v2  ;;  %v670_v7 = vrot.slane %v641_v47, %v669_v3  ;;  %v666_v8 = vrot.slane %v641_v47, %v665_v4  ;;  %v674_v9 = vrot.slane %v641_v47, %v673_v5 }
 0x1eb   :  { %v749_v53 = vpop.f32.mrf.mxu0  ;;  %v820_v54 = vpop.f32.mrf.mxu1 }
 0x1ec   :  { %v750_v57 = vadd.f32 %v749_v53, %v646_v48  ;;  %v821_v58 = vadd.f32 %v820_v54, %v654_v49 }
 0x1ed   :  { %v751_v55 = vpop.f32.mrf.mxu0  ;;  %v822_v56 = vpop.f32.mrf.mxu1 }
 0x1ee   :  { %v752_v59 = vadd.f32 %v751_v55, %v650_v50  ;;  %v823_v60 = vadd.f32 %v822_v56, %v658_v52 }
 0x1f0   :  { %v975_v61 = vcombine.low %v750_v57, %v752_v59  ;;  %v976_v62 = vcombine.low %v821_v58, %v823_v60 }
 0x1f2   :  { %v983_v63 = vrot.slane %v975_v61, %v1304_v51  ;;  %v990_v0 = vrot.slane %v976_v62, %v1304_v51 }
 0x1f4   :  { %v991_v1 = vcombine.low %v983_v63, %v990_v0 }
 0x1f6   :  { %1011 = vst [vmem:[%s1359_s5] sm:$0xff] %v991_v1 }
 0x20c   :  { %v891_v10 = vpop.f32.mrf.mxu0  ;;  %v962_v11 = vpop.f32.mrf.mxu1 }
 0x20d   :  { %v892_v14 = vadd.f32 %v891_v10, %v662_v6  ;;  %v963_v15 = vadd.f32 %v962_v11, %v670_v7 }
 0x20e   :  { %v893_v12 = vpop.f32.mrf.mxu0  ;;  %v964_v13 = vpop.f32.mrf.mxu1 }
 0x20f   :  { %v894_v16 = vadd.f32 %v893_v12, %v666_v8  ;;  %v965_v17 = vadd.f32 %v964_v13, %v674_v9 }
 0x211   :  { %v992_v18 = vcombine.low %v892_v14, %v894_v16  ;;  %v993_v19 = vcombine.low %v963_v15, %v965_v17 }
 0x213   :  { %v1000_v20 = vrot.slane %v992_v18, %v1304_v51  ;;  %v1007_v21 = vrot.slane %v993_v19, %v1304_v51 }
 0x215   :  { %v1008_v22 = vcombine.low %v1000_v20, %v1007_v21 }
 0x217   :  { %1012 = vst [vmem:[%s1359_s5 + $0x8] sm:$0xff] %v1008_v22 }
 0x218   :  { %1249 = dma.done.wait [#allocation4], 32  }
 0x219   :  { %1250 = vsyncadd [#allocation4], 4294967264 }
 0x21a   :  { %1030 = vsyncpa [#allocation3], 1 }
 0x21b   :  { %1031 = vsyncpa [#allocation6], 1 }
 0x21c   :  { %1032 = vsyncpa [#allocation4], 1 }

</bundles_post_ra>
